<compile_context>
chip_gen: v7x
topology: tpu7x:2x2x1
jax: 0.10.0
libtpu: 0.0.40
codegen_flags: <defaults>
</compile_context>

<pallas_src>
import functools

import jax
import jax.numpy as jnp
from jax import lax
from jax.experimental import pallas as pl
from jax.experimental.pallas import tpu as pltpu


def _round_up(x, m):
    return (x + m - 1) // m * m


def _vmem_capacity_bytes():
    """Best-effort VMEM capacity query; conservative 64 MiB (v7x) fallback."""
    try:
        info = pltpu.get_tpu_info()
        for name in ("vmem_capacity_bytes", "vmem_bytes", "vmem_size_bytes"):
            v = getattr(info, name, None)
            if v:
                return int(v)
    except Exception:
        pass
    return 64 * 1024 * 1024


def _pick_tiles(HW, Kd_pad, C_out, out_itemsize, vmem_budget):
    """Pick (C_out_pad, TCO, weight_resident, T, HWp) under a VMEM byte budget."""
    if C_out <= 256:
        c_out_pad = _round_up(C_out, 8)
        tco = c_out_pad                      # single C_out tile, no channel crop
    else:
        tco = 256                            # fill the 256-wide MXU output dim
        c_out_pad = _round_up(C_out, 256)

    w_bytes = c_out_pad * Kd_pad * 2         # bf16 folded weight (+bias column)
    weight_resident = w_bytes <= 8 * 1024 * 1024
    w_cost = 2 * w_bytes if weight_resident else 2 * tco * Kd_pad * 2

    # Double-buffered patch tile (bf16) + double-buffered output tile per 128 lanes.
    per_128_lanes = 2 * Kd_pad * 128 * 2 + 2 * tco * 128 * out_itemsize
    t_max = ((vmem_budget - w_cost) // per_128_lanes) * 128
    t_max = max(128, min(2048, t_max))

    hw128 = _round_up(HW, 128)
    if hw128 <= t_max:
        t = hw128                            # single HW tile (HWp == HW if HW%128==0)
    elif HW % 128 == 0:
        t = 128
        for cand in range(t_max, 127, -128): # largest 128-multiple divisor -> no crop
            if HW % cand == 0:
                t = cand
                break
    else:
        t = t_max
    return c_out_pad, tco, weight_resident, t, _round_up(HW, t)


def _siconv_matmul_kernel(p_ref, w_ref, o_ref, *, apply_relu, tco, slice_weight):
    # p_ref: (1, Kd_pad, T)  bf16 im2col patch tile (lanes = flattened out pixels;
    #        row Kd holds a constant 1.0 so the bias is folded into the matmul).
    # w_ref: (C_out_pad, Kd_pad) resident  OR  (TCO, Kd_pad) tiled, bf16.
    # o_ref: (1, TCO, T)     output tile in x.dtype (lane-dense).
    if slice_weight:
        co = pl.program_id(2)
        start = pl.multiple_of(co * tco, tco)
        w = w_ref[pl.ds(start, tco), :]
    else:
        w = w_ref[...]
    out = jnp.dot(w, p_ref[0], preferred_element_type=jnp.float32)  # one MXU matmul
    if apply_relu:
        out = jnp.maximum(out, 0.0)
    o_ref[0] = out.astype(o_ref.dtype)


def base_si_conv(x, weight, bias, *, stride=1, padding=1, dilation=1,
                 use_bn=False, bn_eps=1e-5, bn_gamma=None, bn_beta=None,
                 bn_mean=None, bn_var=None, activation=None):
    """Forward pass of BaseSIConv.  x: (N, C_in, H, W), NCHW."""
    N, C_in, H, W = x.shape
    C_out, C_in_w, KH, KW = weight.shape
    assert C_in == C_in_w, "groups > 1 not supported"

    H_out = (H + 2 * padding - dilation * (KH - 1) - 1) // stride + 1
    W_out = (W + 2 * padding - dilation * (KW - 1) - 1) // stride + 1
    HW = H_out * W_out
    Kd = C_in * KH * KW

    # ---- fold eval-mode BatchNorm into the conv weight / bias (wrapper-side) ----
    w_f = weight.astype(jnp.float32)
    b_f = bias.astype(jnp.float32)
    if use_bn:
        gamma = jnp.ones((C_out,), jnp.float32) if bn_gamma is None else bn_gamma
        beta = jnp.zeros((C_out,), jnp.float32) if bn_beta is None else bn_beta
        mean = jnp.zeros((C_out,), jnp.float32) if bn_mean is None else bn_mean
        var = jnp.ones((C_out,), jnp.float32) if bn_var is None else bn_var
        scale = gamma / jnp.sqrt(var + bn_eps)
        w_f = w_f * scale[:, None, None, None]
        b_f = (b_f - mean) * scale + beta

    # ---- im2col in the wrapper (layout plumbing): (N, Kd, H_out*W_out) ----
    x_pad = jnp.pad(x.astype(jnp.float32),
                    ((0, 0), (0, 0), (padding, padding), (padding, padding)))
    taps = []
    for kh in range(KH):
        for kw in range(KW):
            h0 = kh * dilation
            w0 = kw * dilation
            taps.append(x_pad[:, :,
                              h0:h0 + (H_out - 1) * stride + 1:stride,
                              w0:w0 + (W_out - 1) * stride + 1:stride])
    patches = jnp.stack(taps, axis=1).reshape(N, Kd, HW)

    # ---- per-generation tile sizing under the real VMEM budget ----
    out_dtype = x.dtype
    out_itemsize = jnp.dtype(out_dtype).itemsize
    Kd_pad = _round_up(Kd + 1, 128)          # +1 row for the folded bias, lane-aligned
    vmem_cap = _vmem_capacity_bytes()
    vmem_limit = min(max(32 * 1024 * 1024, vmem_cap * 3 // 4), 100 * 1024 * 1024)
    vmem_budget = int(vmem_limit * 0.8)
    C_out_pad, TCO, weight_resident, T, HWp = _pick_tiles(
        HW, Kd_pad, C_out, out_itemsize, vmem_budget)
    num_co_tiles = C_out_pad // TCO
    slice_weight = weight_resident and (num_co_tiles > 1)

    # ---- weight layout: (C_out_pad, Kd_pad), rows (c_out), cols (kh, kw, c_in), bias col ----
    w2 = jnp.transpose(w_f, (0, 2, 3, 1)).reshape(C_out, Kd)
    w2 = jnp.pad(w2, ((0, C_out_pad - C_out), (0, Kd_pad - Kd)))
    w2 = w2.at[:, Kd].set(jnp.pad(b_f, (0, C_out_pad - C_out)))   # fold bias into matmul
    w2 = w2.astype(jnp.bfloat16)

    patches = jnp.pad(patches, ((0, 0), (0, Kd_pad - Kd), (0, HWp - HW)))
    patches = patches.at[:, Kd, :].set(1.0)                       # ones row for bias
    patches = patches.astype(jnp.bfloat16)

    apply_relu = (activation == "relu") or (activation is jax.nn.relu)
    kernel = functools.partial(_siconv_matmul_kernel, apply_relu=apply_relu,
                               tco=TCO, slice_weight=slice_weight)

    if weight_resident:
        w_spec = pl.BlockSpec((C_out_pad, Kd_pad), lambda n, hw, co: (0, 0))
    else:
        w_spec = pl.BlockSpec((TCO, Kd_pad), lambda n, hw, co: (co, 0))

    # C_out-tile axis innermost: patch tile block index constant across it (no re-fetch).
    grid = (N, HWp // T, num_co_tiles)
    out = pl.pallas_call(
        kernel,
        out_shape=jax.ShapeDtypeStruct((N, C_out_pad, HWp), out_dtype),
        grid=grid,
        in_specs=[
            pl.BlockSpec((1, Kd_pad, T), lambda n, hw, co: (n, 0, hw)),
            w_spec,
        ],
        out_specs=pl.BlockSpec((1, TCO, T), lambda n, hw, co: (n, co, hw)),
        compiler_params=pltpu.CompilerParams(
            dimension_semantics=("parallel", "parallel", "parallel"),
            vmem_limit_bytes=vmem_limit),
    )(patches, w2)

    if C_out_pad != C_out or HWp != HW:      # no-op (free) for 128-friendly shapes
        out = out[:, :C_out, :HW]
    out = out.reshape(N, C_out, H_out, W_out)
    if activation is not None and not apply_relu:
        # TODO(synk): arbitrary activation callables are applied outside the kernel.
        out = activation(out)
    return out


if __name__ == "__main__":
    key = jax.random.PRNGKey(0)
    kx, kw, kb = jax.random.split(key, 3)

    N, C_in, H, W = 2, 4, 16, 16
    C_out, K = 8, 3
    stride, padding, dilation = 1, 1, 1

    x = jax.random.normal(kx, (N, C_in, H, W), dtype=jnp.float32)
    weight = jax.random.normal(kw, (C_out, C_in, K, K), dtype=jnp.float32) * 0.1
    bias = jax.random.normal(kb, (C_out,), dtype=jnp.float32) * 0.1

    # Reference conv (same semantics as nn.Conv2d forward).
    ref_conv = lax.conv_general_dilated(
        x, weight, window_strides=(stride, stride),
        padding=[(padding, padding), (padding, padding)],
        rhs_dilation=(dilation, dilation),
        dimension_numbers=("NCHW", "OIHW", "NCHW"),
    ) + bias.reshape(1, C_out, 1, 1)

    # 1) BaseSIConv defaults: use_bn=False, activation=None -> conv only.
    out = base_si_conv(x, weight, bias, stride=stride, padding=padding,
                       dilation=dilation, use_bn=False, activation=None)
    out = jax.block_until_ready(out)
    assert out.shape == (N, C_out, H, W)
    err = jnp.max(jnp.abs(out - ref_conv))
    assert err < 5e-2, f"conv-only path mismatch: {err}"

    # 2) use_bn=True (default running stats) + ReLU: exercises folded-BN + relu path.
    eps = 1e-5
    ref_bn = jnp.maximum(ref_conv / jnp.sqrt(1.0 + eps), 0.0)
    out2 = base_si_conv(x, weight, bias, stride=stride, padding=padding,
                        dilation=dilation, use_bn=True, bn_eps=eps, activation="relu")
    out2 = jax.block_until_ready(out2)
    err2 = jnp.max(jnp.abs(out2 - ref_bn))
    assert err2 < 5e-2, f"bn+relu path mismatch: {err2}"

    print("KERNEL_OK")
</pallas_src>

<mosaic_0001>
module attributes {stable_mosaic.version = 11 : i64} {
  func.func @_siconv_matmul_kernel(%arg0: i32, %arg1: i32, %arg2: i32, %arg3: memref<1x128x256xbf16, #tpu.memory_space<vmem>>, %arg4: memref<8x128xbf16, #tpu.memory_space<vmem>>, %arg5: memref<1x8x256xf32, #tpu.memory_space<vmem>>) attributes {dimension_semantics = [#tpu.dimension_semantics<parallel>, #tpu.dimension_semantics<parallel>, #tpu.dimension_semantics<parallel>], iteration_bounds = array<i64: 2, 1, 1>, scalar_prefetch = 0 : i64, scratch_operands = 0 : i64, tpu.core_type = #tpu.core_type<tc>, window_params = [{transform_indices = @transform_0, window_bounds = array<i64: 1, 128, 256>}, {pipeline_mode = #tpu.pipeline_mode<synchronous>, transform_indices = @transform_1, window_bounds = array<i64: 8, 128>}, {transform_indices = @transform_2, window_bounds = array<i64: 1, 8, 256>}]} {
    %c0 = arith.constant 0 : index
    %c0_0 = arith.constant 0 : index
    %0 = vector.load %arg4[%c0, %c0_0] : memref<8x128xbf16, #tpu.memory_space<vmem>>, vector<8x128xbf16>
    %c0_1 = arith.constant 0 : index
    %c0_2 = arith.constant 0 : index
    %c0_3 = arith.constant 0 : index
    %1 = vector.load %arg3[%c0_1, %c0_2, %c0_3] : memref<1x128x256xbf16, #tpu.memory_space<vmem>>, vector<1x128x256xbf16>
    %2 = vector.shape_cast %1 : vector<1x128x256xbf16> to vector<128x256xbf16>
    %cst = arith.constant dense<0.000000e+00> : vector<8x256xf32>
    %3 = tpu.matmul %0, %2, %cst {dimension_numbers = #tpu.dot_dimension_numbers<[1], [0], [0], [1], [0, 0, 1, 1], [], []>} : vector<8x128xbf16>, vector<128x256xbf16>, vector<8x256xf32> -> vector<8x256xf32>
    %c0_4 = arith.constant 0 : index
    %c0_5 = arith.constant 0 : index
    %c0_6 = arith.constant 0 : index
    %4 = vector.load %arg5[%c0_4, %c0_5, %c0_6] : memref<1x8x256xf32, #tpu.memory_space<vmem>>, vector<1x8x256xf32>
    %5 = vector.shape_cast %4 : vector<1x8x256xf32> to vector<8x256xf32>
    %6 = vector.shape_cast %3 : vector<8x256xf32> to vector<1x8x256xf32>
    tpu.vector_store %arg5[%c0_4, %c0_5, %c0_6], %6 {strides = array<i32>} : memref<1x8x256xf32, #tpu.memory_space<vmem>>, vector<1x8x256xf32>,
    return
  }
  func.func @transform_0(%arg0: i32, %arg1: i32, %arg2: i32) -> (i32, i32, i32) {
    %c0_i32 = arith.constant 0 : i32
    %c0_i32_0 = arith.constant 0 : i32
    return %arg0, %c0_i32, %arg1 : i32, i32, i32
  }
  func.func @transform_1(%arg0: i32, %arg1: i32, %arg2: i32) -> (i32, i32) {
    %c0_i32 = arith.constant 0 : i32
    %c0_i32_0 = arith.constant 0 : i32
    %c0_i32_1 = arith.constant 0 : i32
    return %c0_i32, %c0_i32_0 : i32, i32
  }
  func.func @transform_2(%arg0: i32, %arg1: i32, %arg2: i32) -> (i32, i32, i32) {
    %c0_i32 = arith.constant 0 : i32
    return %arg0, %arg2, %arg1 : i32, i32, i32
  }
}

</mosaic_0001>

<bundles_post_ra>
// kernel: tpu_custom_call.1
= control target key start
LH: loop header
LB: loop body
LE: loop exit
PB: predicated region body
PF: predicated region fallthrough
CT: control target
= control target key end

     0   :  { %7 = vsyncpa [#allocation3], 0  ;;  %s1003_s0 = inlined_call_operand.hbm [shape: bf16[2,128,256], index: 0, kind: input, shape index: {}]   ;;  %s1004_s1 = inlined_call_operand.hbm [shape: bf16[8,128], index: 1, kind: input, shape index: {}]   ;;  %s1005_s2 = inlined_call_operand.hbm [shape: f32[2,8,256], index: 2, kind: output, shape index: {}]  }
   0x1   :  { %9 = vsyncpa [#allocation3 + $0x1], 0 }
   0x2   :  { %10 = vsyncpa [#allocation6], 0 }
   0x3   :  { %11 = vsyncpa [#allocation4], 0 }
   0x4   :  { %13 = vsyncpa [#allocation4 + $0x1], 0  ;;  %s765_s9 = smov 0   ;;  %s767_s10 = smov 0  }
   0x5   :  { %s769_s11 = smov 0   ;;  %s771_s12 = smov 0  }
   0x6   :  { %s773_s13 = smov 0   ;;  %s775_s14 = smov 0  }
   0x7 LB: > { %s463_s15 = sadd.s32 4294967295, %s742_s14   ;;  %s464_s16 = sadd.s32 4294967294, %s742_s14   ;;  %s742_s14 = sphi %s775_s14, %s19_s14   ;;  %s738_s13 = sphi %s773_s13, %s1033_s13   ;;  %s734_s12 = sphi %s771_s12, %s1032_s12   ;;  %s730_s11 = sphi %s769_s11, %s1031_s11   ;;  %s726_s10 = sphi %s767_s10, %s1030_s10   ;;  %s722_s9 = sphi %s765_s9, %s1029_s9  }
   0x8   : > { %s47_s17 = sadd.s32 1, %s730_s11  ;;  %p54_p0 = scmp.ne.s32.totalorder %s730_s11, %s726_s10 }
   0x9   : > { %p55_p1 = scmp.eq.s32.totalorder %s742_s14, 0  ;;  %p60_p2 = scmp.ne.s32.totalorder %s726_s10, %s722_s9 }
   0xa   : > { %p803_p3 = scmp.eq.s32.totalorder %s463_s15, 0  ;;  %p109_p4 = scmp.eq.s32.totalorder %s463_s15, 1 }
   0xb   : > { %p807_p5 = por %p55_p1, %p54_p0  ;;  %p115_p6 = scmp.eq.s32.totalorder %s464_s16, 1 }
   0xc   : > { %s1012_s18 = scalar_select %p803_p3, 1, 0 }
   0xd   : > { %p813_p7 = por %p803_p3, %p60_p2  ;;  %p817_p8 = por %p109_p4, %p54_p0 }
   0xe   : > { %p821_p9 = por %p115_p6, %p60_p2  ;;  %p465_p10 = scmp.ge.s32.totalorder %s742_s14, 1 }
   0xf   : > { %s1014_s20 = scalar_select %p813_p7, 1, 0 }
  0x10   : > { %s1015_s21 = scalar_select %p817_p8, 1, 0 }
  0x11   : > { %s1016_s22 = scalar_select %p821_p9, 1, 0 }
  0x12   : > { %p122_p11 = scmp.lt.s32.totalorder %s742_s14, 3  ;;  %s744_s24 = smov [#allocation5]  }
  0x13   : > { %s135_s25 = sshll.u32 %s744_s24, 4  ;;  %p519_p1 = scmp.lt.s32.totalorder %s742_s14, 2  ;;  %s136_s25 = int_to_ptr.vmem [resolvable:$true] %s135_s25 }
  0x14   : > { %p828_p13 = pnand %p465_p10, %p122_p11  ;;  %s38_s28 = sadd.s32 1, %s738_s13 }
  0x15   : > { %p837_p4 = pnand %p519_p1, %p807_p5  ;;  %p848_p6 = scmp.ge.s32.totalorder %s38_s28, 2 }
  0x16   : > { %s1017_s23 = scalar_select %p828_p13, 1, 0 }
  0x17   : > { %p506_p0 = pneg %p828_p13  ;;  %s146_s30 = sand.u32 1, %s730_s11  }
  0x18   : > { %s1018_s26 = scalar_select %p837_p4, 1, 0 }
  0x19   : > { %p843_p2 = pnand %p506_p0, %p803_p3  ;;  %s598_s5 = scalar_lea.hbm %s1004_s1, 64 }
  0x1a   : > { %s1020_s29 = scalar_select %p848_p6, 1, 0 }
  0x1b   : > { %p599_p5 = scmp.ne.s32.totalorder %s1004_s1, %s598_s5  ;;  %p600_p10 = pneg %p843_p2 }
  0x1c   : > { %p605_p0 = scmp.lt.u32.totalorder %s598_s5, %s1004_s1 }
  0x1d   : > { %p601_p11 = pnand %p600_p10, %p599_p5 }
  0x1f   : > { %p602_p1 = pneg %p601_p11 }
  0x21   : > { %p607_p12 = pnand %p605_p0, %p602_p1 }
  0x23   : > { %610 = shalt.err (!%p607_p12)
}
  0x24   : > { %s611_s16 = scalar_lea.vmem %s136_s25, 64  ;;  %p619_p7 = scmp.lt.s32.totalorder %s136_s25, %s136_s25 }
  0x25   : > { %p612_p9 = scmp.ne.s32.totalorder %s136_s25, %s611_s16  ;;  %p620_p13 = scmp.lt.s32.totalorder %s611_s16, %s611_s16 }
  0x27   : > { %p614_p8 = pnand %p612_p9, %p600_p10  ;;  %p621_p4 = por %p620_p13, %p619_p7 }
  0x29   : > { %p615_p3 = pneg %p614_p8 }
  0x2b   : > { %p622_p6 = pnand %p621_p4, %p615_p3 }
  0x2d   : > { %625 = shalt.err (!%p622_p6)
}
  0x2e   : > { %509 = dma.hbm_to_vmem [thread:$0]  (!%p843_p2), %s1004_s1, 64, %s136_s25, [#allocation6]  }
  0x2f   : > { %p1021_p9 = scmp.ne.s32.totalorder %s1020_s29, 0  ;;  %s468_s3 = sshll.u32 %s146_s30, 7 }
  0x30   : > { %s496_s5 = sshll.u32 %s738_s13, 11  ;;  %s150_s8 = scalar_lea.vmem [#allocation2], %s468_s3 }
  0x31   : > { %s1035_s28 = smov (%p1021_p9, %s38_s28), 0  ;;  %s879_s7 = scalar_lea.hbm %s1003_s0, %s496_s5 }
  0x32   : > { %s42_s4 = ssub.s32 %s738_s13, %s1035_s28  ;;  %s159_s15 = sshll.u32 %s150_s8, 4  ;;  %s886_s15 = int_to_ptr.vmem [resolvable:$true] %s159_s15 }
  0x33   : > { %p45_p3 = scmp.eq.s32.totalorder %s42_s4, 0  ;;  %s888_s29 = scalar_lea.sflag [#allocation3], %s146_s30 }
  0x34   : > { %s626_s16 = scalar_lea.hbm %s879_s7, 2048  ;;  %p1022_p8 = scmp.ne.s32.totalorder %s1018_s26, 0 }
  0x35   : > { %s884_s25 = scalar_select %p45_p3, %s730_s11, %s47_s17  }
  0x36   : > { %p627_p7 = scmp.ne.s32.totalorder %s879_s7, %s626_s16  ;;  %p628_p12 = pneg %p1022_p8 }
  0x37   : > { %s631_s3 = scalar_lea.hbm %s1003_s0, 4096  ;;  %p632_p2 = scmp.lt.u32.totalorder %s879_s7, %s1003_s0 }
  0x38   : > { %p629_p13 = pnand %p628_p12, %p627_p7  ;;  %p633_p6 = scmp.lt.u32.totalorder %s631_s3, %s626_s16 }
  0x39   : > { %p635_p10 = scmp.lt.u32.totalorder %s626_s16, %s879_s7 }
  0x3a   : > { %p630_p4 = pneg %p629_p13  ;;  %p634_p5 = por %p633_p6, %p632_p2 }
  0x3c   : > { %p636_p11 = por %p635_p10, %p634_p5 }
  0x3e   : > { %p637_p1 = pnand %p636_p11, %p630_p4 }
  0x40   : > { %640 = shalt.err (!%p637_p1)
}
  0x41   : > { %s641_s17 = scalar_lea.vmem %s886_s15, 2048  ;;  %s745_s30 = smov [#allocation2]  }
  0x42   : > { %p642_p0 = scmp.ne.s32.totalorder %s886_s15, %s641_s17  ;;  %s646_s27 = sshll.u32 %s745_s30, 4  ;;  %s647_s27 = int_to_ptr.vmem [resolvable:$false] %s646_s27 }
  0x43   : > { %s648_s6 = scalar_lea.vmem %s647_s27, 4096  ;;  %p649_p7 = scmp.lt.s32.totalorder %s886_s15, %s647_s27 }
  0x44   : > { %p644_p9 = pnand %p642_p0, %p628_p12  ;;  %p650_p13 = scmp.lt.s32.totalorder %s648_s6, %s641_s17 }
  0x46   : > { %p645_p3 = pneg %p644_p9  ;;  %p651_p2 = por %p650_p13, %p649_p7 }
  0x48   : > { %p652_p6 = pnand %p651_p2, %p645_p3 }
  0x4a   : > { %655 = shalt.err (!%p652_p6)
}
  0x4b   : > { %s746_s8 = smov 128   ;;  %s747_s16 = smov 8  }
  0x4c   : > { %513 = dma.hbm_to_vmem [thread:$0]  (!%p1022_p8), %s879_s7, 2048, %s886_s15, %s888_s29, %s746_s8, %s746_s8, %s747_s16  }
  0x4d   : > { %p1023_p12 = scmp.ne.s32.totalorder %s1017_s23, 0 }
  0x4e   : > { %s919_s19 = sand.u32 (!%p1023_p12), 1, %s726_s10   ;;  %p1024_p4 = scmp.ne.s32.totalorder (!%p1023_p12), %s1014_s20, 0 }
  0x4f   : > { %171 = sbr.rel (%p1023_p12) target bundleno = 351 (0x15f), region = 28  ;;  %s472_s24 = sshll.u32 (!%p1023_p12), %s919_s19, 7 }
  0x50   : > { %s174_s3 = scalar_lea.sflag (!%p1023_p12), [#allocation3], %s919_s19  ;;  %s923_s4 = scalar_lea.vmem (!%p1023_p12), [#allocation2], %s472_s24 }
  0x56   : > { %709 = dma.done.wait (%p1024_p4), %s174_s3, 2048  }
  0x57   : > { %711 = vsyncadd (%p1024_p4), %s174_s3, 4294965248  ;;  %p1025_p8 = scmp.ne.s32.totalorder %s1012_s18, 0 }
  0x59   : > { %713 = dma.done.wait (%p1025_p8), [#allocation6], 64  }
  0x5a   : > { %715 = vsyncadd (%p1025_p8), [#allocation6], 4294967232  ;;  %v748_v0 = vmov 0   ;;  %v574_v1 = vld [vmem:[%s923_s4 + $0x4] ss:$8 sps:$4 sm:$0xff]   ;;  %s474_s18 = sshll.u32 %s919_s19, 4 }
  0x5b   : > { %334 = vmatprep.mubr.bf16.mxu0 %v748_v0  ;;  %v576_v2 = vld [vmem:[%s923_s4] ss:$8 sps:$4 sm:$0xff]   ;;  %302 = vmatprep.subr.bf16.mxu0 %v574_v1  ;;  %v577_v3 = vld [vmem:[%s923_s4 + $0x14] ss:$8 sps:$4 sm:$0xff]   ;;  %v579_v4 = vld [vmem:[%s923_s4 + $0x10] ss:$8 sps:$4 sm:$0xff]  }
  0x5c   : > { %303 = vmatpush1.bf16.msra.mxu0 %v576_v2  ;;  %v580_v5 = vld [vmem:[%s923_s4 + $0x24] ss:$8 sps:$4 sm:$0xff]   ;;  %v582_v6 = vld [vmem:[%s923_s4 + $0x20] ss:$8 sps:$4 sm:$0xff]   ;;  %v583_v7 = vld [vmem:[%s923_s4 + $0x34] ss:$8 sps:$4 sm:$0xff]  }
  0x5d   : > { %304 = vmatprep.subr.bf16.mxu0 %v577_v3  ;;  %v585_v8 = vld [vmem:[%s923_s4 + $0x30] ss:$8 sps:$4 sm:$0xff]   ;;  %v586_v9 = vld [vmem:[%s923_s4 + $0x44] ss:$8 sps:$4 sm:$0xff]   ;;  %v588_v10 = vld [vmem:[%s923_s4 + $0x40] ss:$8 sps:$4 sm:$0xff]  }
  0x5e   : > { %v589_v11 = vld [vmem:[%s923_s4 + $0x54] ss:$8 sps:$4 sm:$0xff]   ;;  %v591_v12 = vld [vmem:[%s923_s4 + $0x50] ss:$8 sps:$4 sm:$0xff]   ;;  %v592_v13 = vld [vmem:[%s923_s4 + $0x64] ss:$8 sps:$4 sm:$0xff]  }
  0x5f   : > { %v594_v14 = vld [vmem:[%s923_s4 + $0x60] ss:$8 sps:$4 sm:$0xff]   ;;  %v595_v15 = vld [vmem:[%s923_s4 + $0x74] ss:$8 sps:$4 sm:$0xff]   ;;  %v597_v16 = vld [vmem:[%s923_s4 + $0x70] ss:$8 sps:$4 sm:$0xff]  }
  0x60   : > { %305 = vmatpush1.bf16.msra.mxu0 %v579_v4  ;;  %v205_v17 = vld [vmem:[#allocation5] sm:$0xf]  ;;  %s201_s20 = scalar_lea.vmem [#allocation7], %s474_s18  ;;  %s497_s26 = sshll.u32 %s734_s12, 8 }
  0x61   : > { %306 = vmatprep.subr.bf16.mxu0 %v580_v5  ;;  %s364_s23 = sshll.u32 %s201_s20, 4  ;;  %s956_s29 = scalar_lea.hbm %s1005_s2, %s497_s26  ;;  %s951_s23 = int_to_ptr.vmem [resolvable:$true] %s364_s23 }
  0x62   : > { %s346_s5 = scalar_lea.sflag [#allocation4], %s919_s19  ;;  %s656_s17 = scalar_lea.vmem %s951_s23, 256 }
  0x63   : > { %p657_p5 = scmp.ne.s32.totalorder %s951_s23, %s656_s17  ;;  %p1026_p10 = scmp.ne.s32.totalorder %s1015_s21, 0 }
  0x64   : > { %307 = vmatpush1.bf16.msra.mxu0 %v582_v6  ;;  %s749_s12 = smov [#allocation7]  }
  0x65   : > { %308 = vmatprep.subr.bf16.mxu0 %v583_v7  ;;  %p658_p11 = pnand %p657_p5, %p1026_p10  ;;  %s660_s30 = sshll.u32 %s749_s12, 4  ;;  %s661_s30 = int_to_ptr.vmem [resolvable:$false] %s660_s30 }
  0x66   : > { %s662_s27 = scalar_lea.vmem %s661_s30, 512  ;;  %p663_p0 = scmp.lt.s32.totalorder %s951_s23, %s661_s30 }
  0x67   : > { %p659_p1 = pneg %p658_p11  ;;  %p664_p9 = scmp.lt.s32.totalorder %s662_s27, %s656_s17 }
  0x68   : > { %309 = vmatpush1.bf16.msra.mxu0 %v585_v8 }
  0x69   : > { %310 = vmatprep.subr.bf16.mxu0 %v586_v9  ;;  %p665_p3 = por %p664_p9, %p663_p0 }
  0x6b   : > { %p666_p7 = pnand %p665_p3, %p659_p1 }
  0x6c   : > { %311 = vmatpush1.bf16.msra.mxu0 %v588_v10 }
  0x6d   : > { %312 = vmatprep.subr.bf16.mxu0 %v589_v11 }
  0x70   : > { %313 = vmatpush1.bf16.msra.mxu0 %v591_v12 }
  0x71   : > { %314 = vmatprep.subr.bf16.mxu0 %v592_v13 }
  0x74   : > { %315 = vmatpush1.bf16.msra.mxu0 %v594_v14 }
  0x75   : > { %316 = vmatprep.subr.bf16.mxu0 %v595_v15 }
  0x78   : > { %317 = vmatpush1.bf16.msra.mxu0 %v597_v16 }
  0x7b   : > { %335 = vmatmul.mubr.bf16.vlgmr.msra.gmra.mrb[0].mxu0 %v205_v17 }
 0x14e   : > { %v336_v18 = vpop.f32.mrb[0].mxu0 }
 0x14f   : > { %343 = vst [vmem:[%s201_s20] sm:$0xff] %v336_v18  ;;  %v338_v19 = vpop.f32.mrb[1].mxu0 }
 0x150   : > { %344 = vst [vmem:[%s201_s20 + $0x8] sm:$0xff] %v338_v19  ;;  %v340_v20 = vpop.f32.mrb[2].mxu0 }
 0x151   : > { %v341_v21 = vpop.f32.mrb[3].mxu0 }
 0x152   : > { %669 = shalt.err (!%p666_p7)
}
 0x153   : > { %s670_s6 = scalar_lea.hbm %s956_s29, 256  ;;  %s674_s19 = scalar_lea.hbm %s1005_s2, 512 }
 0x154   : > { %p671_p13 = scmp.ne.s32.totalorder %s956_s29, %s670_s6  ;;  %p675_p12 = scmp.lt.u32.totalorder %s956_s29, %s1005_s2 }
 0x155   : > { %p676_p4 = scmp.lt.u32.totalorder %s674_s19, %s670_s6  ;;  %p678_p5 = scmp.lt.u32.totalorder %s670_s6, %s956_s29 }
 0x156   : > { %p672_p2 = pnand %p671_p13, %p1026_p10 }
 0x157   : > { %p677_p8 = por %p676_p4, %p675_p12 }
 0x158   : > { %p673_p6 = pneg %p672_p2 }
 0x159   : > { %p679_p11 = por %p678_p5, %p677_p8 }
 0x15b   : > { %p680_p1 = pnand %p679_p11, %p673_p6 }
 0x15d   : > { %683 = shalt.err (!%p680_p1)
}
 0x15e   : > { %504 = dma.vmem_to_hbm [thread:$0]  (%p1026_p10), %s951_s23, 256, %s956_s29, %s346_s5  }
 0x15f PF: > { %s376_s4 = sand.u32 1, %s722_s9   ;;  %p1027_p0 = scmp.ne.s32.totalorder %s1016_s22, 0 }
 0x160   : > { %p1028_p9 = scmp.ge.s32.totalorder %s742_s14, 2  ;;  %s377_s18 = scalar_lea.sflag [#allocation4], %s376_s4 }
 0x162   : > { %p515_p3 = pnand %p1028_p9, %p1027_p0 }
 0x164   : > { %717 = dma.done.wait (!%p515_p3), %s377_s18, 256  }
 0x165   : > { %719 = vsyncadd (!%p515_p3), %s377_s18, 4294967040  ;;  %s19_s14 = sadd.s32 1, %s742_s14   ;;  %s1029_s9 = smov %s726_s10 }
 0x166   : > { %p16_p7 = scmp.ge.s32.totalorder %s19_s14, 4   ;;  %s1030_s10 = smov %s730_s11 }
 0x167   : > { %s1031_s11 = smov %s884_s25  ;;  %s1032_s12 = smov %s738_s13 }
 0x168   : > { %s1033_s13 = smov %s1035_s28  ;;  %18 = sbr.rel (!%p16_p7) target bundleno = 7 (0x7), region = 77 }
 0x16f   :  { %382 = vsyncpa [#allocation3], 1 }
 0x170   :  { %384 = vsyncpa [#allocation3 + $0x1], 1 }
 0x171   :  { %385 = vsyncpa [#allocation6], 1 }
 0x172   :  { %386 = vsyncpa [#allocation4], 1 }
 0x173   :  { %388 = vsyncpa [#allocation4 + $0x1], 1 }

</bundles_post_ra>
